<compile_context>
chip_gen: v7x
topology: tpu7x:2x2x1
jax: 0.10.0
libtpu: 0.0.40
codegen_flags: <defaults>
</compile_context>

<pallas_src>
import functools

import numpy as np
import jax
import jax.numpy as jnp
from jax import lax
from jax.experimental import pallas as pl
from jax.experimental.pallas import tpu as pltpu


def _round_up(n, m):
    return ((n + m - 1) // m) * m


def _channelnet_kernel(w1_ref, w2_ref, a_ref, x_ref, out_ref, *, F, K, L):
    # w1_ref : (F*K,) SMEM  conv1 weights, flattened row-major (f, k)
    # w2_ref : (F*K,) SMEM  conv2 weights, flattened row-major (f, k)
    # a_ref  : (3,)   SMEM  polynomial coefficients a0, a1, a2
    # x_ref  : (TB, LP) VMEM input tile; columns >= L are zero
    # out_ref: (TB, LP) VMEM output tile; columns >= L are don't-care
    TB, LP = x_ref.shape
    p = K // 2

    a0 = a_ref[0]
    a1 = a_ref[1]
    a2 = a_ref[2]

    x = x_ref[...]

    # conv1 taps via XLU rolls (jnp.roll semantics: roll(x, s)[t] = x[t - s]).
    # tap_k[t] = x[t + (k - p)]  =>  shift = (p - k) mod LP.
    taps = []
    for k in range(K):
        shift = (p - k) % LP
        taps.append(pltpu.roll(x, shift=shift, axis=1) if shift else x)

    # s_k[t] = sum_f w2[f, k] * g_f[t]; conv2 then only needs K rolls of s_k.
    s = [None] * K

    # F, K are small -> full static unroll keeps everything in vregs.
    for f in range(F):
        # conv1, filter f:  h[t] = sum_k w1[f, k] * x[t + k - p]
        h = w1_ref[f * K + 0] * taps[0]
        for k in range(1, K):
            h = h + w1_ref[f * K + k] * taps[k]

        # cubic nonlinearity, Horner form: a0*h + a1*h^2 + a2*h^3
        g = h * (a0 + h * (a1 + a2 * h))

        # conv2 weights applied before the shift (shift-invariant reordering)
        for k in range(K):
            contrib = w2_ref[f * K + k] * g
            s[k] = contrib if s[k] is None else s[k] + contrib

    # The hidden activation is only valid on columns [0, L); columns >= L must
    # act as conv2's zero padding (conv1 spills / wraps data there otherwise).
    need_mask = L < LP
    if need_mask:
        col = lax.broadcasted_iota(jnp.int32, (TB, LP), 1)
        maskf = (col < L).astype(jnp.float32)

    out = None
    for k in range(K):
        sk = s[k] * maskf if need_mask else s[k]
        shift = (p - k) % LP
        term = pltpu.roll(sk, shift=shift, axis=1) if shift else sk
        out = term if out is None else out + term

    out_ref[...] = out


def _pick_batch_tile(B, LP):
    """Largest sublane-aligned batch tile whose double-buffered in+out working
    set stays comfortably inside the scoped VMEM default."""
    budget_bytes = 8 * 1024 * 1024          # leave plenty of headroom
    per_row_bytes = 16 * LP                 # (in + out) * double-buffer * 4 B
    tb = max(8, min(512, (budget_bytes // per_row_bytes) // 8 * 8))
    tb = min(tb, _round_up(B, 8))           # don't over-pad tiny batches
    return tb


def channelnet_forward(x, w1, w2, a):
    """x: (B, 1, L); w1: (F, 1, K); w2: (1, F, K); a: (3,). Returns (B, 1, L) f32."""
    B, c_in, L = x.shape
    assert c_in == 1
    F, c_in2, K = w1.shape
    assert c_in2 == 1 and w2.shape == (1, F, K)
    assert K % 2 == 1, "filter_length must be odd for 'same' Conv1d semantics"
    p = K // 2

    # Lane-dense padded length: multiple of 128 and >= L + p so rotations never
    # wrap real data into the columns we keep (zero tail emulates zero padding).
    LP = _round_up(L + p, 128)
    TB = _pick_batch_tile(B, LP)
    Bp = _round_up(B, TB)

    x2d = jnp.pad(x[:, 0, :].astype(jnp.float32), ((0, Bp - B), (0, LP - L)))
    w1f = w1[:, 0, :].reshape(-1).astype(jnp.float32)   # (F*K,)
    w2f = w2[0].reshape(-1).astype(jnp.float32)         # (F*K,)
    a32 = jnp.asarray(a, jnp.float32)                   # (3,)

    kernel = functools.partial(_channelnet_kernel, F=F, K=K, L=L)

    out2d = pl.pallas_call(
        kernel,
        out_shape=jax.ShapeDtypeStruct((Bp, LP), jnp.float32),
        grid_spec=pltpu.PrefetchScalarGridSpec(
            num_scalar_prefetch=3,                       # w1, w2, a -> SMEM
            grid=(Bp // TB,),
            in_specs=[pl.BlockSpec((TB, LP), lambda i, *_: (i, 0))],
            out_specs=pl.BlockSpec((TB, LP), lambda i, *_: (i, 0)),
        ),
        compiler_params=pltpu.CompilerParams(
            dimension_semantics=("parallel",),           # batch tiles independent
        ),
    )(w1f, w2f, a32, x2d)

    return out2d[:B, None, :L]


def channelnet_reference(x, w1, w2, a):
    """Pure-JAX reference matching torch Conv1d (cross-correlation) semantics."""
    p = w1.shape[-1] // 2
    dn = ("NCH", "OIH", "NCH")
    h = lax.conv_general_dilated(x, w1, (1,), [(p, p)], dimension_numbers=dn)
    g = a[0] * h + a[1] * h ** 2 + a[2] * h ** 3
    y = lax.conv_general_dilated(g, w2, (1,), [(p, p)], dimension_numbers=dn)
    return y


if __name__ == "__main__":
    key = jax.random.PRNGKey(0)
    B, L = 2, 16
    num_filters, filter_length = 8, 5   # odd filter_length => 'same' output length
    k1, k2, k3 = jax.random.split(key, 3)

    # Deterministic Xavier-uniform init (same fan rule as torch.nn.init).
    def xavier(k, shape):
        fan_in = shape[1] * shape[2]
        fan_out = shape[0] * shape[2]
        bound = float(np.sqrt(6.0 / (fan_in + fan_out)))
        return jax.random.uniform(k, shape, jnp.float32, -bound, bound)

    w1 = xavier(k1, (num_filters, 1, filter_length))    # conv1.weight
    w2 = xavier(k2, (1, num_filters, filter_length))    # conv2.weight
    # nontrivial coefficients so the polynomial path is exercised
    a = jnp.array([0.5, 0.25, 0.1], jnp.float32)

    x = jax.random.normal(k3, (B, 1, L), jnp.float32)

    y = jax.block_until_ready(channelnet_forward(x, w1, w2, a))
    y_ref = channelnet_reference(x.astype(jnp.float32), w1, w2, a)
    np.testing.assert_allclose(np.asarray(y), np.asarray(y_ref),
                               rtol=1e-5, atol=1e-5)
    print("KERNEL_OK")
</pallas_src>

<mosaic_0001>
module attributes {stable_mosaic.version = 11 : i64} {
  func.func @_channelnet_kernel(%arg0: i32, %arg1: memref<40xf32, #tpu.memory_space<smem>>, %arg2: memref<40xf32, #tpu.memory_space<smem>>, %arg3: memref<3xf32, #tpu.memory_space<smem>>, %arg4: memref<8x128xf32, #tpu.memory_space<vmem>>, %arg5: memref<8x128xf32, #tpu.memory_space<vmem>>) attributes {dimension_semantics = [#tpu.dimension_semantics<parallel>], iteration_bounds = array<i64: 1>, scalar_prefetch = 3 : i64, scratch_operands = 0 : i64, tpu.core_type = #tpu.core_type<tc>, window_params = [{transform_indices = @transform_0, window_bounds = array<i64: 8, 128>}, {transform_indices = @transform_1, window_bounds = array<i64: 8, 128>}]} {
    %c0 = arith.constant 0 : index
    %0 = memref.load %arg3[%c0] : memref<3xf32, #tpu.memory_space<smem>>
    %c1 = arith.constant 1 : index
    %1 = memref.load %arg3[%c1] : memref<3xf32, #tpu.memory_space<smem>>
    %c2 = arith.constant 2 : index
    %2 = memref.load %arg3[%c2] : memref<3xf32, #tpu.memory_space<smem>>
    %c0_0 = arith.constant 0 : index
    %c0_1 = arith.constant 0 : index
    %3 = vector.load %arg4[%c0_0, %c0_1] : memref<8x128xf32, #tpu.memory_space<vmem>>, vector<8x128xf32>
    %c2_i32 = arith.constant 2 : i32
    %4 = tpu.dynamic_rotate %3 by %c2_i32 dim 1 : vector<8x128xf32>, i32 -> vector<8x128xf32>
    %c1_i32 = arith.constant 1 : i32
    %5 = tpu.dynamic_rotate %3 by %c1_i32 dim 1 : vector<8x128xf32>, i32 -> vector<8x128xf32>
    %c127_i32 = arith.constant 127 : i32
    %6 = tpu.dynamic_rotate %3 by %c127_i32 dim 1 : vector<8x128xf32>, i32 -> vector<8x128xf32>
    %c126_i32 = arith.constant 126 : i32
    %7 = tpu.dynamic_rotate %3 by %c126_i32 dim 1 : vector<8x128xf32>, i32 -> vector<8x128xf32>
    %c0_2 = arith.constant 0 : index
    %8 = memref.load %arg1[%c0_2] : memref<40xf32, #tpu.memory_space<smem>>
    %9 = vector.broadcast %8 : f32 to vector<8x128xf32>
    %10 = arith.mulf %9, %4 : vector<8x128xf32>
    %c1_3 = arith.constant 1 : index
    %11 = memref.load %arg1[%c1_3] : memref<40xf32, #tpu.memory_space<smem>>
    %12 = vector.broadcast %11 : f32 to vector<8x128xf32>
    %13 = arith.mulf %12, %5 : vector<8x128xf32>
    %14 = arith.addf %10, %13 : vector<8x128xf32>
    %c2_4 = arith.constant 2 : index
    %15 = memref.load %arg1[%c2_4] : memref<40xf32, #tpu.memory_space<smem>>
    %16 = vector.broadcast %15 : f32 to vector<8x128xf32>
    %17 = arith.mulf %16, %3 : vector<8x128xf32>
    %18 = arith.addf %14, %17 : vector<8x128xf32>
    %c3 = arith.constant 3 : index
    %19 = memref.load %arg1[%c3] : memref<40xf32, #tpu.memory_space<smem>>
    %20 = vector.broadcast %19 : f32 to vector<8x128xf32>
    %21 = arith.mulf %20, %6 : vector<8x128xf32>
    %22 = arith.addf %18, %21 : vector<8x128xf32>
    %c4 = arith.constant 4 : index
    %23 = memref.load %arg1[%c4] : memref<40xf32, #tpu.memory_space<smem>>
    %24 = vector.broadcast %23 : f32 to vector<8x128xf32>
    %25 = arith.mulf %24, %7 : vector<8x128xf32>
    %26 = arith.addf %22, %25 : vector<8x128xf32>
    %27 = vector.broadcast %2 : f32 to vector<8x128xf32>
    %28 = arith.mulf %27, %26 : vector<8x128xf32>
    %29 = vector.broadcast %1 : f32 to vector<8x128xf32>
    %30 = arith.addf %29, %28 : vector<8x128xf32>
    %31 = arith.mulf %26, %30 : vector<8x128xf32>
    %32 = vector.broadcast %0 : f32 to vector<8x128xf32>
    %33 = arith.addf %32, %31 : vector<8x128xf32>
    %34 = arith.mulf %26, %33 : vector<8x128xf32>
    %c0_5 = arith.constant 0 : index
    %35 = memref.load %arg2[%c0_5] : memref<40xf32, #tpu.memory_space<smem>>
    %36 = vector.broadcast %35 : f32 to vector<8x128xf32>
    %37 = arith.mulf %36, %34 : vector<8x128xf32>
    %c1_6 = arith.constant 1 : index
    %38 = memref.load %arg2[%c1_6] : memref<40xf32, #tpu.memory_space<smem>>
    %39 = vector.broadcast %38 : f32 to vector<8x128xf32>
    %40 = arith.mulf %39, %34 : vector<8x128xf32>
    %c2_7 = arith.constant 2 : index
    %41 = memref.load %arg2[%c2_7] : memref<40xf32, #tpu.memory_space<smem>>
    %42 = vector.broadcast %41 : f32 to vector<8x128xf32>
    %43 = arith.mulf %42, %34 : vector<8x128xf32>
    %c3_8 = arith.constant 3 : index
    %44 = memref.load %arg2[%c3_8] : memref<40xf32, #tpu.memory_space<smem>>
    %45 = vector.broadcast %44 : f32 to vector<8x128xf32>
    %46 = arith.mulf %45, %34 : vector<8x128xf32>
    %c4_9 = arith.constant 4 : index
    %47 = memref.load %arg2[%c4_9] : memref<40xf32, #tpu.memory_space<smem>>
    %48 = vector.broadcast %47 : f32 to vector<8x128xf32>
    %49 = arith.mulf %48, %34 : vector<8x128xf32>
    %c5 = arith.constant 5 : index
    %50 = memref.load %arg1[%c5] : memref<40xf32, #tpu.memory_space<smem>>
    %51 = vector.broadcast %50 : f32 to vector<8x128xf32>
    %52 = arith.mulf %51, %4 : vector<8x128xf32>
    %c6 = arith.constant 6 : index
    %53 = memref.load %arg1[%c6] : memref<40xf32, #tpu.memory_space<smem>>
    %54 = vector.broadcast %53 : f32 to vector<8x128xf32>
    %55 = arith.mulf %54, %5 : vector<8x128xf32>
    %56 = arith.addf %52, %55 : vector<8x128xf32>
    %c7 = arith.constant 7 : index
    %57 = memref.load %arg1[%c7] : memref<40xf32, #tpu.memory_space<smem>>
    %58 = vector.broadcast %57 : f32 to vector<8x128xf32>
    %59 = arith.mulf %58, %3 : vector<8x128xf32>
    %60 = arith.addf %56, %59 : vector<8x128xf32>
    %c8 = arith.constant 8 : index
    %61 = memref.load %arg1[%c8] : memref<40xf32, #tpu.memory_space<smem>>
    %62 = vector.broadcast %61 : f32 to vector<8x128xf32>
    %63 = arith.mulf %62, %6 : vector<8x128xf32>
    %64 = arith.addf %60, %63 : vector<8x128xf32>
    %c9 = arith.constant 9 : index
    %65 = memref.load %arg1[%c9] : memref<40xf32, #tpu.memory_space<smem>>
    %66 = vector.broadcast %65 : f32 to vector<8x128xf32>
    %67 = arith.mulf %66, %7 : vector<8x128xf32>
    %68 = arith.addf %64, %67 : vector<8x128xf32>
    %69 = vector.broadcast %2 : f32 to vector<8x128xf32>
    %70 = arith.mulf %69, %68 : vector<8x128xf32>
    %71 = vector.broadcast %1 : f32 to vector<8x128xf32>
    %72 = arith.addf %71, %70 : vector<8x128xf32>
    %73 = arith.mulf %68, %72 : vector<8x128xf32>
    %74 = vector.broadcast %0 : f32 to vector<8x128xf32>
    %75 = arith.addf %74, %73 : vector<8x128xf32>
    %76 = arith.mulf %68, %75 : vector<8x128xf32>
    %c5_10 = arith.constant 5 : index
    %77 = memref.load %arg2[%c5_10] : memref<40xf32, #tpu.memory_space<smem>>
    %78 = vector.broadcast %77 : f32 to vector<8x128xf32>
    %79 = arith.mulf %78, %76 : vector<8x128xf32>
    %80 = arith.addf %37, %79 : vector<8x128xf32>
    %c6_11 = arith.constant 6 : index
    %81 = memref.load %arg2[%c6_11] : memref<40xf32, #tpu.memory_space<smem>>
    %82 = vector.broadcast %81 : f32 to vector<8x128xf32>
    %83 = arith.mulf %82, %76 : vector<8x128xf32>
    %84 = arith.addf %40, %83 : vector<8x128xf32>
    %c7_12 = arith.constant 7 : index
    %85 = memref.load %arg2[%c7_12] : memref<40xf32, #tpu.memory_space<smem>>
    %86 = vector.broadcast %85 : f32 to vector<8x128xf32>
    %87 = arith.mulf %86, %76 : vector<8x128xf32>
    %88 = arith.addf %43, %87 : vector<8x128xf32>
    %c8_13 = arith.constant 8 : index
    %89 = memref.load %arg2[%c8_13] : memref<40xf32, #tpu.memory_space<smem>>
    %90 = vector.broadcast %89 : f32 to vector<8x128xf32>
    %91 = arith.mulf %90, %76 : vector<8x128xf32>
    %92 = arith.addf %46, %91 : vector<8x128xf32>
    %c9_14 = arith.constant 9 : index
    %93 = memref.load %arg2[%c9_14] : memref<40xf32, #tpu.memory_space<smem>>
    %94 = vector.broadcast %93 : f32 to vector<8x128xf32>
    %95 = arith.mulf %94, %76 : vector<8x128xf32>
    %96 = arith.addf %49, %95 : vector<8x128xf32>
    %c10 = arith.constant 10 : index
    %97 = memref.load %arg1[%c10] : memref<40xf32, #tpu.memory_space<smem>>
    %98 = vector.broadcast %97 : f32 to vector<8x128xf32>
    %99 = arith.mulf %98, %4 : vector<8x128xf32>
    %c11 = arith.constant 11 : index
    %100 = memref.load %arg1[%c11] : memref<40xf32, #tpu.memory_space<smem>>
    %101 = vector.broadcast %100 : f32 to vector<8x128xf32>
    %102 = arith.mulf %101, %5 : vector<8x128xf32>
    %103 = arith.addf %99, %102 : vector<8x128xf32>
    %c12 = arith.constant 12 : index
    %104 = memref.load %arg1[%c12] : memref<40xf32, #tpu.memory_space<smem>>
    %105 = vector.broadcast %104 : f32 to vector<8x128xf32>
    %106 = arith.mulf %105, %3 : vector<8x128xf32>
    %107 = arith.addf %103, %106 : vector<8x128xf32>
    %c13 = arith.constant 13 : index
    %108 = memref.load %arg1[%c13] : memref<40xf32, #tpu.memory_space<smem>>
    %109 = vector.broadcast %108 : f32 to vector<8x128xf32>
    %110 = arith.mulf %109, %6 : vector<8x128xf32>
    %111 = arith.addf %107, %110 : vector<8x128xf32>
    %c14 = arith.constant 14 : index
    %112 = memref.load %arg1[%c14] : memref<40xf32, #tpu.memory_space<smem>>
    %113 = vector.broadcast %112 : f32 to vector<8x128xf32>
    %114 = arith.mulf %113, %7 : vector<8x128xf32>
    %115 = arith.addf %111, %114 : vector<8x128xf32>
    %116 = vector.broadcast %2 : f32 to vector<8x128xf32>
    %117 = arith.mulf %116, %115 : vector<8x128xf32>
    %118 = vector.broadcast %1 : f32 to vector<8x128xf32>
    %119 = arith.addf %118, %117 : vector<8x128xf32>
    %120 = arith.mulf %115, %119 : vector<8x128xf32>
    %121 = vector.broadcast %0 : f32 to vector<8x128xf32>
    %122 = arith.addf %121, %120 : vector<8x128xf32>
    %123 = arith.mulf %115, %122 : vector<8x128xf32>
    %c10_15 = arith.constant 10 : index
    %124 = memref.load %arg2[%c10_15] : memref<40xf32, #tpu.memory_space<smem>>
    %125 = vector.broadcast %124 : f32 to vector<8x128xf32>
    %126 = arith.mulf %125, %123 : vector<8x128xf32>
    %127 = arith.addf %80, %126 : vector<8x128xf32>
    %c11_16 = arith.constant 11 : index
    %128 = memref.load %arg2[%c11_16] : memref<40xf32, #tpu.memory_space<smem>>
    %129 = vector.broadcast %128 : f32 to vector<8x128xf32>
    %130 = arith.mulf %129, %123 : vector<8x128xf32>
    %131 = arith.addf %84, %130 : vector<8x128xf32>
    %c12_17 = arith.constant 12 : index
    %132 = memref.load %arg2[%c12_17] : memref<40xf32, #tpu.memory_space<smem>>
    %133 = vector.broadcast %132 : f32 to vector<8x128xf32>
    %134 = arith.mulf %133, %123 : vector<8x128xf32>
    %135 = arith.addf %88, %134 : vector<8x128xf32>
    %c13_18 = arith.constant 13 : index
    %136 = memref.load %arg2[%c13_18] : memref<40xf32, #tpu.memory_space<smem>>
    %137 = vector.broadcast %136 : f32 to vector<8x128xf32>
    %138 = arith.mulf %137, %123 : vector<8x128xf32>
    %139 = arith.addf %92, %138 : vector<8x128xf32>
    %c14_19 = arith.constant 14 : index
    %140 = memref.load %arg2[%c14_19] : memref<40xf32, #tpu.memory_space<smem>>
    %141 = vector.broadcast %140 : f32 to vector<8x128xf32>
    %142 = arith.mulf %141, %123 : vector<8x128xf32>
    %143 = arith.addf %96, %142 : vector<8x128xf32>
    %c15 = arith.constant 15 : index
    %144 = memref.load %arg1[%c15] : memref<40xf32, #tpu.memory_space<smem>>
    %145 = vector.broadcast %144 : f32 to vector<8x128xf32>
    %146 = arith.mulf %145, %4 : vector<8x128xf32>
    %c16 = arith.constant 16 : index
    %147 = memref.load %arg1[%c16] : memref<40xf32, #tpu.memory_space<smem>>
    %148 = vector.broadcast %147 : f32 to vector<8x128xf32>
    %149 = arith.mulf %148, %5 : vector<8x128xf32>
    %150 = arith.addf %146, %149 : vector<8x128xf32>
    %c17 = arith.constant 17 : index
    %151 = memref.load %arg1[%c17] : memref<40xf32, #tpu.memory_space<smem>>
    %152 = vector.broadcast %151 : f32 to vector<8x128xf32>
    %153 = arith.mulf %152, %3 : vector<8x128xf32>
    %154 = arith.addf %150, %153 : vector<8x128xf32>
    %c18 = arith.constant 18 : index
    %155 = memref.load %arg1[%c18] : memref<40xf32, #tpu.memory_space<smem>>
    %156 = vector.broadcast %155 : f32 to vector<8x128xf32>
    %157 = arith.mulf %156, %6 : vector<8x128xf32>
    %158 = arith.addf %154, %157 : vector<8x128xf32>
    %c19 = arith.constant 19 : index
    %159 = memref.load %arg1[%c19] : memref<40xf32, #tpu.memory_space<smem>>
    %160 = vector.broadcast %159 : f32 to vector<8x128xf32>
    %161 = arith.mulf %160, %7 : vector<8x128xf32>
    %162 = arith.addf %158, %161 : vector<8x128xf32>
    %163 = vector.broadcast %2 : f32 to vector<8x128xf32>
    %164 = arith.mulf %163, %162 : vector<8x128xf32>
    %165 = vector.broadcast %1 : f32 to vector<8x128xf32>
    %166 = arith.addf %165, %164 : vector<8x128xf32>
    %167 = arith.mulf %162, %166 : vector<8x128xf32>
    %168 = vector.broadcast %0 : f32 to vector<8x128xf32>
    %169 = arith.addf %168, %167 : vector<8x128xf32>
    %170 = arith.mulf %162, %169 : vector<8x128xf32>
    %c15_20 = arith.constant 15 : index
    %171 = memref.load %arg2[%c15_20] : memref<40xf32, #tpu.memory_space<smem>>
    %172 = vector.broadcast %171 : f32 to vector<8x128xf32>
    %173 = arith.mulf %172, %170 : vector<8x128xf32>
    %174 = arith.addf %127, %173 : vector<8x128xf32>
    %c16_21 = arith.constant 16 : index
    %175 = memref.load %arg2[%c16_21] : memref<40xf32, #tpu.memory_space<smem>>
    %176 = vector.broadcast %175 : f32 to vector<8x128xf32>
    %177 = arith.mulf %176, %170 : vector<8x128xf32>
    %178 = arith.addf %131, %177 : vector<8x128xf32>
    %c17_22 = arith.constant 17 : index
    %179 = memref.load %arg2[%c17_22] : memref<40xf32, #tpu.memory_space<smem>>
    %180 = vector.broadcast %179 : f32 to vector<8x128xf32>
    %181 = arith.mulf %180, %170 : vector<8x128xf32>
    %182 = arith.addf %135, %181 : vector<8x128xf32>
    %c18_23 = arith.constant 18 : index
    %183 = memref.load %arg2[%c18_23] : memref<40xf32, #tpu.memory_space<smem>>
    %184 = vector.broadcast %183 : f32 to vector<8x128xf32>
    %185 = arith.mulf %184, %170 : vector<8x128xf32>
    %186 = arith.addf %139, %185 : vector<8x128xf32>
    %c19_24 = arith.constant 19 : index
    %187 = memref.load %arg2[%c19_24] : memref<40xf32, #tpu.memory_space<smem>>
    %188 = vector.broadcast %187 : f32 to vector<8x128xf32>
    %189 = arith.mulf %188, %170 : vector<8x128xf32>
    %190 = arith.addf %143, %189 : vector<8x128xf32>
    %c20 = arith.constant 20 : index
    %191 = memref.load %arg1[%c20] : memref<40xf32, #tpu.memory_space<smem>>
    %192 = vector.broadcast %191 : f32 to vector<8x128xf32>
    %193 = arith.mulf %192, %4 : vector<8x128xf32>
    %c21 = arith.constant 21 : index
    %194 = memref.load %arg1[%c21] : memref<40xf32, #tpu.memory_space<smem>>
    %195 = vector.broadcast %194 : f32 to vector<8x128xf32>
    %196 = arith.mulf %195, %5 : vector<8x128xf32>
    %197 = arith.addf %193, %196 : vector<8x128xf32>
    %c22 = arith.constant 22 : index
    %198 = memref.load %arg1[%c22] : memref<40xf32, #tpu.memory_space<smem>>
    %199 = vector.broadcast %198 : f32 to vector<8x128xf32>
    %200 = arith.mulf %199, %3 : vector<8x128xf32>
    %201 = arith.addf %197, %200 : vector<8x128xf32>
    %c23 = arith.constant 23 : index
    %202 = memref.load %arg1[%c23] : memref<40xf32, #tpu.memory_space<smem>>
    %203 = vector.broadcast %202 : f32 to vector<8x128xf32>
    %204 = arith.mulf %203, %6 : vector<8x128xf32>
    %205 = arith.addf %201, %204 : vector<8x128xf32>
    %c24 = arith.constant 24 : index
    %206 = memref.load %arg1[%c24] : memref<40xf32, #tpu.memory_space<smem>>
    %207 = vector.broadcast %206 : f32 to vector<8x128xf32>
    %208 = arith.mulf %207, %7 : vector<8x128xf32>
    %209 = arith.addf %205, %208 : vector<8x128xf32>
    %210 = vector.broadcast %2 : f32 to vector<8x128xf32>
    %211 = arith.mulf %210, %209 : vector<8x128xf32>
    %212 = vector.broadcast %1 : f32 to vector<8x128xf32>
    %213 = arith.addf %212, %211 : vector<8x128xf32>
    %214 = arith.mulf %209, %213 : vector<8x128xf32>
    %215 = vector.broadcast %0 : f32 to vector<8x128xf32>
    %216 = arith.addf %215, %214 : vector<8x128xf32>
    %217 = arith.mulf %209, %216 : vector<8x128xf32>
    %c20_25 = arith.constant 20 : index
    %218 = memref.load %arg2[%c20_25] : memref<40xf32, #tpu.memory_space<smem>>
    %219 = vector.broadcast %218 : f32 to vector<8x128xf32>
    %220 = arith.mulf %219, %217 : vector<8x128xf32>
    %221 = arith.addf %174, %220 : vector<8x128xf32>
    %c21_26 = arith.constant 21 : index
    %222 = memref.load %arg2[%c21_26] : memref<40xf32, #tpu.memory_space<smem>>
    %223 = vector.broadcast %222 : f32 to vector<8x128xf32>
    %224 = arith.mulf %223, %217 : vector<8x128xf32>
    %225 = arith.addf %178, %224 : vector<8x128xf32>
    %c22_27 = arith.constant 22 : index
    %226 = memref.load %arg2[%c22_27] : memref<40xf32, #tpu.memory_space<smem>>
    %227 = vector.broadcast %226 : f32 to vector<8x128xf32>
    %228 = arith.mulf %227, %217 : vector<8x128xf32>
    %229 = arith.addf %182, %228 : vector<8x128xf32>
    %c23_28 = arith.constant 23 : index
    %230 = memref.load %arg2[%c23_28] : memref<40xf32, #tpu.memory_space<smem>>
    %231 = vector.broadcast %230 : f32 to vector<8x128xf32>
    %232 = arith.mulf %231, %217 : vector<8x128xf32>
    %233 = arith.addf %186, %232 : vector<8x128xf32>
    %c24_29 = arith.constant 24 : index
    %234 = memref.load %arg2[%c24_29] : memref<40xf32, #tpu.memory_space<smem>>
    %235 = vector.broadcast %234 : f32 to vector<8x128xf32>
    %236 = arith.mulf %235, %217 : vector<8x128xf32>
    %237 = arith.addf %190, %236 : vector<8x128xf32>
    %c25 = arith.constant 25 : index
    %238 = memref.load %arg1[%c25] : memref<40xf32, #tpu.memory_space<smem>>
    %239 = vector.broadcast %238 : f32 to vector<8x128xf32>
    %240 = arith.mulf %239, %4 : vector<8x128xf32>
    %c26 = arith.constant 26 : index
    %241 = memref.load %arg1[%c26] : memref<40xf32, #tpu.memory_space<smem>>
    %242 = vector.broadcast %241 : f32 to vector<8x128xf32>
    %243 = arith.mulf %242, %5 : vector<8x128xf32>
    %244 = arith.addf %240, %243 : vector<8x128xf32>
    %c27 = arith.constant 27 : index
    %245 = memref.load %arg1[%c27] : memref<40xf32, #tpu.memory_space<smem>>
    %246 = vector.broadcast %245 : f32 to vector<8x128xf32>
    %247 = arith.mulf %246, %3 : vector<8x128xf32>
    %248 = arith.addf %244, %247 : vector<8x128xf32>
    %c28 = arith.constant 28 : index
    %249 = memref.load %arg1[%c28] : memref<40xf32, #tpu.memory_space<smem>>
    %250 = vector.broadcast %249 : f32 to vector<8x128xf32>
    %251 = arith.mulf %250, %6 : vector<8x128xf32>
    %252 = arith.addf %248, %251 : vector<8x128xf32>
    %c29 = arith.constant 29 : index
    %253 = memref.load %arg1[%c29] : memref<40xf32, #tpu.memory_space<smem>>
    %254 = vector.broadcast %253 : f32 to vector<8x128xf32>
    %255 = arith.mulf %254, %7 : vector<8x128xf32>
    %256 = arith.addf %252, %255 : vector<8x128xf32>
    %257 = vector.broadcast %2 : f32 to vector<8x128xf32>
    %258 = arith.mulf %257, %256 : vector<8x128xf32>
    %259 = vector.broadcast %1 : f32 to vector<8x128xf32>
    %260 = arith.addf %259, %258 : vector<8x128xf32>
    %261 = arith.mulf %256, %260 : vector<8x128xf32>
    %262 = vector.broadcast %0 : f32 to vector<8x128xf32>
    %263 = arith.addf %262, %261 : vector<8x128xf32>
    %264 = arith.mulf %256, %263 : vector<8x128xf32>
    %c25_30 = arith.constant 25 : index
    %265 = memref.load %arg2[%c25_30] : memref<40xf32, #tpu.memory_space<smem>>
    %266 = vector.broadcast %265 : f32 to vector<8x128xf32>
    %267 = arith.mulf %266, %264 : vector<8x128xf32>
    %268 = arith.addf %221, %267 : vector<8x128xf32>
    %c26_31 = arith.constant 26 : index
    %269 = memref.load %arg2[%c26_31] : memref<40xf32, #tpu.memory_space<smem>>
    %270 = vector.broadcast %269 : f32 to vector<8x128xf32>
    %271 = arith.mulf %270, %264 : vector<8x128xf32>
    %272 = arith.addf %225, %271 : vector<8x128xf32>
    %c27_32 = arith.constant 27 : index
    %273 = memref.load %arg2[%c27_32] : memref<40xf32, #tpu.memory_space<smem>>
    %274 = vector.broadcast %273 : f32 to vector<8x128xf32>
    %275 = arith.mulf %274, %264 : vector<8x128xf32>
    %276 = arith.addf %229, %275 : vector<8x128xf32>
    %c28_33 = arith.constant 28 : index
    %277 = memref.load %arg2[%c28_33] : memref<40xf32, #tpu.memory_space<smem>>
    %278 = vector.broadcast %277 : f32 to vector<8x128xf32>
    %279 = arith.mulf %278, %264 : vector<8x128xf32>
    %280 = arith.addf %233, %279 : vector<8x128xf32>
    %c29_34 = arith.constant 29 : index
    %281 = memref.load %arg2[%c29_34] : memref<40xf32, #tpu.memory_space<smem>>
    %282 = vector.broadcast %281 : f32 to vector<8x128xf32>
    %283 = arith.mulf %282, %264 : vector<8x128xf32>
    %284 = arith.addf %237, %283 : vector<8x128xf32>
    %c30 = arith.constant 30 : index
    %285 = memref.load %arg1[%c30] : memref<40xf32, #tpu.memory_space<smem>>
    %286 = vector.broadcast %285 : f32 to vector<8x128xf32>
    %287 = arith.mulf %286, %4 : vector<8x128xf32>
    %c31 = arith.constant 31 : index
    %288 = memref.load %arg1[%c31] : memref<40xf32, #tpu.memory_space<smem>>
    %289 = vector.broadcast %288 : f32 to vector<8x128xf32>
    %290 = arith.mulf %289, %5 : vector<8x128xf32>
    %291 = arith.addf %287, %290 : vector<8x128xf32>
    %c32 = arith.constant 32 : index
    %292 = memref.load %arg1[%c32] : memref<40xf32, #tpu.memory_space<smem>>
    %293 = vector.broadcast %292 : f32 to vector<8x128xf32>
    %294 = arith.mulf %293, %3 : vector<8x128xf32>
    %295 = arith.addf %291, %294 : vector<8x128xf32>
    %c33 = arith.constant 33 : index
    %296 = memref.load %arg1[%c33] : memref<40xf32, #tpu.memory_space<smem>>
    %297 = vector.broadcast %296 : f32 to vector<8x128xf32>
    %298 = arith.mulf %297, %6 : vector<8x128xf32>
    %299 = arith.addf %295, %298 : vector<8x128xf32>
    %c34 = arith.constant 34 : index
    %300 = memref.load %arg1[%c34] : memref<40xf32, #tpu.memory_space<smem>>
    %301 = vector.broadcast %300 : f32 to vector<8x128xf32>
    %302 = arith.mulf %301, %7 : vector<8x128xf32>
    %303 = arith.addf %299, %302 : vector<8x128xf32>
    %304 = vector.broadcast %2 : f32 to vector<8x128xf32>
    %305 = arith.mulf %304, %303 : vector<8x128xf32>
    %306 = vector.broadcast %1 : f32 to vector<8x128xf32>
    %307 = arith.addf %306, %305 : vector<8x128xf32>
    %308 = arith.mulf %303, %307 : vector<8x128xf32>
    %309 = vector.broadcast %0 : f32 to vector<8x128xf32>
    %310 = arith.addf %309, %308 : vector<8x128xf32>
    %311 = arith.mulf %303, %310 : vector<8x128xf32>
    %c30_35 = arith.constant 30 : index
    %312 = memref.load %arg2[%c30_35] : memref<40xf32, #tpu.memory_space<smem>>
    %313 = vector.broadcast %312 : f32 to vector<8x128xf32>
    %314 = arith.mulf %313, %311 : vector<8x128xf32>
    %315 = arith.addf %268, %314 : vector<8x128xf32>
    %c31_36 = arith.constant 31 : index
    %316 = memref.load %arg2[%c31_36] : memref<40xf32, #tpu.memory_space<smem>>
    %317 = vector.broadcast %316 : f32 to vector<8x128xf32>
    %318 = arith.mulf %317, %311 : vector<8x128xf32>
    %319 = arith.addf %272, %318 : vector<8x128xf32>
    %c32_37 = arith.constant 32 : index
    %320 = memref.load %arg2[%c32_37] : memref<40xf32, #tpu.memory_space<smem>>
    %321 = vector.broadcast %320 : f32 to vector<8x128xf32>
    %322 = arith.mulf %321, %311 : vector<8x128xf32>
    %323 = arith.addf %276, %322 : vector<8x128xf32>
    %c33_38 = arith.constant 33 : index
    %324 = memref.load %arg2[%c33_38] : memref<40xf32, #tpu.memory_space<smem>>
    %325 = vector.broadcast %324 : f32 to vector<8x128xf32>
    %326 = arith.mulf %325, %311 : vector<8x128xf32>
    %327 = arith.addf %280, %326 : vector<8x128xf32>
    %c34_39 = arith.constant 34 : index
    %328 = memref.load %arg2[%c34_39] : memref<40xf32, #tpu.memory_space<smem>>
    %329 = vector.broadcast %328 : f32 to vector<8x128xf32>
    %330 = arith.mulf %329, %311 : vector<8x128xf32>
    %331 = arith.addf %284, %330 : vector<8x128xf32>
    %c35 = arith.constant 35 : index
    %332 = memref.load %arg1[%c35] : memref<40xf32, #tpu.memory_space<smem>>
    %333 = vector.broadcast %332 : f32 to vector<8x128xf32>
    %334 = arith.mulf %333, %4 : vector<8x128xf32>
    %c36 = arith.constant 36 : index
    %335 = memref.load %arg1[%c36] : memref<40xf32, #tpu.memory_space<smem>>
    %336 = vector.broadcast %335 : f32 to vector<8x128xf32>
    %337 = arith.mulf %336, %5 : vector<8x128xf32>
    %338 = arith.addf %334, %337 : vector<8x128xf32>
    %c37 = arith.constant 37 : index
    %339 = memref.load %arg1[%c37] : memref<40xf32, #tpu.memory_space<smem>>
    %340 = vector.broadcast %339 : f32 to vector<8x128xf32>
    %341 = arith.mulf %340, %3 : vector<8x128xf32>
    %342 = arith.addf %338, %341 : vector<8x128xf32>
    %c38 = arith.constant 38 : index
    %343 = memref.load %arg1[%c38] : memref<40xf32, #tpu.memory_space<smem>>
    %344 = vector.broadcast %343 : f32 to vector<8x128xf32>
    %345 = arith.mulf %344, %6 : vector<8x128xf32>
    %346 = arith.addf %342, %345 : vector<8x128xf32>
    %c39 = arith.constant 39 : index
    %347 = memref.load %arg1[%c39] : memref<40xf32, #tpu.memory_space<smem>>
    %348 = vector.broadcast %347 : f32 to vector<8x128xf32>
    %349 = arith.mulf %348, %7 : vector<8x128xf32>
    %350 = arith.addf %346, %349 : vector<8x128xf32>
    %351 = vector.broadcast %2 : f32 to vector<8x128xf32>
    %352 = arith.mulf %351, %350 : vector<8x128xf32>
    %353 = vector.broadcast %1 : f32 to vector<8x128xf32>
    %354 = arith.addf %353, %352 : vector<8x128xf32>
    %355 = arith.mulf %350, %354 : vector<8x128xf32>
    %356 = vector.broadcast %0 : f32 to vector<8x128xf32>
    %357 = arith.addf %356, %355 : vector<8x128xf32>
    %358 = arith.mulf %350, %357 : vector<8x128xf32>
    %c35_40 = arith.constant 35 : index
    %359 = memref.load %arg2[%c35_40] : memref<40xf32, #tpu.memory_space<smem>>
    %360 = vector.broadcast %359 : f32 to vector<8x128xf32>
    %361 = arith.mulf %360, %358 : vector<8x128xf32>
    %362 = arith.addf %315, %361 : vector<8x128xf32>
    %c36_41 = arith.constant 36 : index
    %363 = memref.load %arg2[%c36_41] : memref<40xf32, #tpu.memory_space<smem>>
    %364 = vector.broadcast %363 : f32 to vector<8x128xf32>
    %365 = arith.mulf %364, %358 : vector<8x128xf32>
    %366 = arith.addf %319, %365 : vector<8x128xf32>
    %c37_42 = arith.constant 37 : index
    %367 = memref.load %arg2[%c37_42] : memref<40xf32, #tpu.memory_space<smem>>
    %368 = vector.broadcast %367 : f32 to vector<8x128xf32>
    %369 = arith.mulf %368, %358 : vector<8x128xf32>
    %370 = arith.addf %323, %369 : vector<8x128xf32>
    %c38_43 = arith.constant 38 : index
    %371 = memref.load %arg2[%c38_43] : memref<40xf32, #tpu.memory_space<smem>>
    %372 = vector.broadcast %371 : f32 to vector<8x128xf32>
    %373 = arith.mulf %372, %358 : vector<8x128xf32>
    %374 = arith.addf %327, %373 : vector<8x128xf32>
    %c39_44 = arith.constant 39 : index
    %375 = memref.load %arg2[%c39_44] : memref<40xf32, #tpu.memory_space<smem>>
    %376 = vector.broadcast %375 : f32 to vector<8x128xf32>
    %377 = arith.mulf %376, %358 : vector<8x128xf32>
    %378 = arith.addf %331, %377 : vector<8x128xf32>
    %379 = tpu.iota {dimensions = array<i32: 1>} : vector<8x128xi32>
    %c16_i32 = arith.constant 16 : i32
    %380 = vector.broadcast %c16_i32 : i32 to vector<8x128xi32>
    %381 = arith.cmpi slt, %379, %380 : vector<8x128xi32>
    %382 = arith.extui %381 : vector<8x128xi1> to vector<8x128xi32>
    %383 = arith.sitofp %382 : vector<8x128xi32> to vector<8x128xf32>
    %384 = arith.mulf %362, %383 : vector<8x128xf32>
    %c2_i32_45 = arith.constant 2 : i32
    %385 = tpu.dynamic_rotate %384 by %c2_i32_45 dim 1 : vector<8x128xf32>, i32 -> vector<8x128xf32>
    %386 = arith.mulf %366, %383 : vector<8x128xf32>
    %c1_i32_46 = arith.constant 1 : i32
    %387 = tpu.dynamic_rotate %386 by %c1_i32_46 dim 1 : vector<8x128xf32>, i32 -> vector<8x128xf32>
    %388 = arith.addf %385, %387 : vector<8x128xf32>
    %389 = arith.mulf %370, %383 : vector<8x128xf32>
    %390 = arith.addf %388, %389 : vector<8x128xf32>
    %391 = arith.mulf %374, %383 : vector<8x128xf32>
    %c127_i32_47 = arith.constant 127 : i32
    %392 = tpu.dynamic_rotate %391 by %c127_i32_47 dim 1 : vector<8x128xf32>, i32 -> vector<8x128xf32>
    %393 = arith.addf %390, %392 : vector<8x128xf32>
    %394 = arith.mulf %378, %383 : vector<8x128xf32>
    %c126_i32_48 = arith.constant 126 : i32
    %395 = tpu.dynamic_rotate %394 by %c126_i32_48 dim 1 : vector<8x128xf32>, i32 -> vector<8x128xf32>
    %396 = arith.addf %393, %395 : vector<8x128xf32>
    %c0_49 = arith.constant 0 : index
    %c0_50 = arith.constant 0 : index
    %397 = vector.load %arg5[%c0_49, %c0_50] : memref<8x128xf32, #tpu.memory_space<vmem>>, vector<8x128xf32>
    tpu.vector_store %arg5[%c0_49, %c0_50], %396 {strides = array<i32>} : memref<8x128xf32, #tpu.memory_space<vmem>>, vector<8x128xf32>,
    return
  }
  func.func @transform_0(%arg0: i32, %arg1: memref<40xf32, #tpu.memory_space<smem>>, %arg2: memref<40xf32, #tpu.memory_space<smem>>, %arg3: memref<3xf32, #tpu.memory_space<smem>>) -> (i32, i32) {
    %c0_i32 = arith.constant 0 : i32
    %c0_i32_0 = arith.constant 0 : i32
    return %arg0, %c0_i32 : i32, i32
  }
  func.func @transform_1(%arg0: i32, %arg1: memref<40xf32, #tpu.memory_space<smem>>, %arg2: memref<40xf32, #tpu.memory_space<smem>>, %arg3: memref<3xf32, #tpu.memory_space<smem>>) -> (i32, i32) {
    %c0_i32 = arith.constant 0 : i32
    %c0_i32_0 = arith.constant 0 : i32
    return %arg0, %c0_i32 : i32, i32
  }
}

</mosaic_0001>

<bundles_post_ra>
// kernel: tpu_custom_call.1
= control target key start
LH: loop header
LB: loop body
LE: loop exit
PB: predicated region body
PF: predicated region fallthrough
CT: control target
= control target key end

     0   :  { %s1147_s0 = inlined_call_operand.hbm [shape: f32[40], index: 0, kind: input, shape index: {}]   ;;  %s1148_s3 = inlined_call_operand.vmem [shape: f32[8,128], index: 3, kind: input, shape index: {}]   ;;  %s1149_s4 = inlined_call_operand.hbm [shape: f32[8,128], index: 4, kind: output, shape index: {}]   ;;  %s1150_s1 = inlined_call_operand.vmem [shape: f32[40], index: 1, kind: input, shape index: {}]   ;;  %s1151_s2 = inlined_call_operand.vmem [shape: f32[3], index: 2, kind: input, shape index: {}]  }
   0x1   :  { %1212 = sst [smem:[#allocation63_spill]] %s1149_s4  ;;  %s513_s17 = scalar_lea.hbm %s1147_s0, 16 }
   0x2   :  { %p514_p0 = scmp.ne.s32.totalorder %s1147_s0, %s513_s17  ;;  %p517_p1 = scmp.lt.u32.totalorder %s513_s17, %s1147_s0 }
   0x4   :  { %p519_p2 = pnand %p517_p1, %p514_p0 }
   0x6   :  { %522 = shalt.err (!%p519_p2)  }
   0x7   :  { %s573_s22 = smov [#allocation3]   ;;  %s11_s27 = sshll.u32 %s1150_s1, 4  ;;  %s12_s27 = int_to_ptr.vmem [resolvable:$true] %s11_s27 }
   0x8   :  { %10 = dma.hbm_to_smem %s1147_s0, 16, %s573_s22, [#allocation2] }
   0x9   :  { %s15_s30 = sshll.u32 %s1151_s2, 4  ;;  %s523_s5 = scalar_lea.vmem %s12_s27, 16  ;;  %s16_s30 = int_to_ptr.vmem [resolvable:$true] %s15_s30 }
   0xa   :  { %p524_p3 = scmp.ne.s32.totalorder %s12_s27, %s523_s5  ;;  %p528_p4 = scmp.lt.s32.totalorder %s12_s27, %s12_s27 }
   0xb   :  { %p529_p5 = scmp.lt.s32.totalorder %s523_s5, %s523_s5 }
   0xd   :  { %p530_p6 = por %p529_p5, %p528_p4 }
   0xf   :  { %p531_p7 = pnand %p530_p6, %p524_p3 }
  0x11   :  { %534 = shalt.err (!%p531_p7)  }
  0x12   :  { %s574_s6 = smov [#allocation4]   ;;  %s535_s0 = scalar_lea.vmem %s16_s30, 16 }
  0x13   :  { %14 = dma.vmem_to_smem %s12_s27, 16, %s574_s6, [#allocation2] }
  0x14   :  { %p536_p8 = scmp.ne.s32.totalorder %s16_s30, %s535_s0  ;;  %p540_p9 = scmp.lt.s32.totalorder %s16_s30, %s16_s30 }
  0x15   :  { %p541_p10 = scmp.lt.s32.totalorder %s535_s0, %s535_s0 }
  0x17   :  { %p542_p11 = por %p541_p10, %p540_p9 }
  0x19   :  { %p543_p12 = pnand %p542_p11, %p536_p8 }
  0x1b   :  { %546 = shalt.err (!%p543_p12)  }
  0x1c   :  { %s575_s1 = smov [#allocation5]  }
  0x1d   :  { %18 = dma.vmem_to_smem %s16_s30, 16, %s575_s1, [#allocation2] }
  0x1e   :  { %569 = dma.done.wait [#allocation2], 48 }
  0x1f   :  { %570 = vsyncadd [#allocation2], 4294967248 }
  0x20   :  { %20 = sfence }
  0x21   :  { %v628_v0 = vld [vmem:[%s1148_s3] sm:$0xff] }
  0x22   :  { %21 = vsyncpa [#allocation7], 0  ;;  %s1154_s8 = smov 2   ;;  %s1152_s9 = smov 127   ;;  %v386_v15 = vlaneseq  ;;  %v580_v57 = vmov 0.0  }
  0x23   :  { %28 = vrot.lane.b32.xlu0 %v628_v0, %s1154_s8  ;;  %32 = vrot.lane.b32.xlu1 %v628_v0, %s1152_s9  ;;  %s1155_s10 = smov 1   ;;  %s1153_s11 = smov 126  }
  0x24   :  { %s638_s12 = sld [smem:[#allocation3]]  ;;  %s640_s3 = sld [smem:[#allocation3 + $0x5]]  ;;  %v387_v31 = vand.u32 127, %v386_v15 }
  0x25   :  { %s642_s13 = sld [smem:[#allocation3 + $0xa]]  ;;  %s644_s14 = sld [smem:[#allocation3 + $0xf]] }
  0x26   :  { %s646_s15 = sld [smem:[#allocation3 + $0x14]]  ;;  %s648_s16 = sld [smem:[#allocation3 + $0x19]]  ;;  %vm388_vm0 = vcmp.lt.s32.totalorder %v387_v31, 16 }
  0x27   :  { %30 = vrot.lane.b32.xlu0 %v628_v0, %s1155_s10  ;;  %34 = vrot.lane.b32.xlu1 %v628_v0, %s1153_s11  ;;  %s650_s17 = sld [smem:[#allocation3 + $0x1e]]  ;;  %s652_s18 = sld [smem:[#allocation3 + $0x23]]  ;;  %v863_v58 = vsel %vm388_vm0, 1.0, %v580_v57 }
  0x28   :  { %s654_s19 = sld [smem:[#allocation3 + $0x1]]  ;;  %s656_s20 = sld [smem:[#allocation3 + $0x6]] }
  0x29   :  { %s658_s21 = sld [smem:[#allocation3 + $0xb]]  ;;  %s660_s22 = sld [smem:[#allocation3 + $0x10]] }
  0x2a   :  { %1213 = sst [smem:[#allocation10_spill]] %s638_s12  ;;  %s662_s23 = sld [smem:[#allocation3 + $0x15]]  ;;  %v37_v1 = vstv %s638_s12  ;;  %v79_v2 = vstv %s640_s3 }
  0x2b   :  { %1214 = sst [smem:[#allocation11_spill]] %s640_s3  ;;  %s666_s25 = sld [smem:[#allocation3 + $0x1f]]  ;;  %v123_v3 = vstv %s642_s13  ;;  %v167_v4 = vstv %s644_s14 }
  0x2c   :  { %1215 = sst [smem:[#allocation12_spill]] %s642_s13  ;;  %s664_s24 = sld [smem:[#allocation3 + $0x1a]]  ;;  %v211_v5 = vstv %s646_s15  ;;  %v255_v6 = vstv %s648_s16 }
  0x2d   :  { %1216 = sst [smem:[#allocation13_spill]] %s644_s14  ;;  %s670_s27 = sld [smem:[#allocation3 + $0x2]]  ;;  %v299_v7 = vstv %s650_s17  ;;  %v343_v8 = vstv %s652_s18 }
  0x2e   :  { %1217 = sst [smem:[#allocation14_spill]] %s646_s15  ;;  %s668_s26 = sld [smem:[#allocation3 + $0x24]]  ;;  %v40_v9 = vstv %s654_s19  ;;  %v82_v10 = vstv %s656_s20 }
  0x2f   :  { %1218 = sst [smem:[#allocation15_spill]] %s648_s16  ;;  %s672_s28 = sld [smem:[#allocation3 + $0x3]]  ;;  %v126_v11 = vstv %s658_s21  ;;  %v170_v12 = vstv %s660_s22 }
  0x30   :  { %1219 = sst [smem:[#allocation16_spill]] %s650_s17  ;;  %s676_s30 = sld [smem:[#allocation3 + $0x8]]  ;;  %v214_v13 = vstv %s662_s23 }
  0x31   :  { %1220 = sst [smem:[#allocation17_spill]] %s652_s18  ;;  %s674_s29 = sld [smem:[#allocation3 + $0x7]]  ;;  %v302_v17 = vstv %s666_s25 }
  0x32   :  { %1221 = sst [smem:[#allocation18_spill]] %s654_s19  ;;  %s678_s5 = sld [smem:[#allocation3 + $0xc]]  ;;  %v258_v16 = vstv %s664_s24 }
  0x33   :  { %1222 = sst [smem:[#allocation19_spill]] %s656_s20  ;;  %s680_s6 = sld [smem:[#allocation3 + $0xd]]  ;;  %v44_v14 = vstv %s670_s27 }
  0x34   :  { %1223 = sst [smem:[#allocation20_spill]] %s658_s21  ;;  %s682_s0 = sld [smem:[#allocation3 + $0x11]]  ;;  %v346_v18 = vstv %s668_s26  ;;  %v780_v27 = vmul.f32 %v44_v14, %v628_v0 }
  0x35   :  { %1224 = sst [smem:[#allocation21_spill]] %s660_s22  ;;  %s684_s1 = sld [smem:[#allocation3 + $0x12]]  ;;  %v48_v20 = vstv %s672_s28 }
  0x36   :  { %1225 = sst [smem:[#allocation22_spill]] %s662_s23  ;;  %s686_s2 = sld [smem:[#allocation3 + $0x16]]  ;;  %v90_v21 = vstv %s676_s30 }
  0x37   :  { %1226 = sst [smem:[#allocation23_spill]] %s664_s24  ;;  %s688_s7 = sld [smem:[#allocation3 + $0x17]]  ;;  %v86_v19 = vstv %s674_s29 }
  0x38   :  { %1227 = sst [smem:[#allocation24_spill]] %s666_s25  ;;  %s690_s9 = sld [smem:[#allocation3 + $0x1b]]  ;;  %v130_v22 = vstv %s678_s5  ;;  %v789_v30 = vmul.f32 %v86_v19, %v628_v0 }
  0x39   :  { %1228 = sst [smem:[#allocation25_spill]] %s668_s26  ;;  %s692_s11 = sld [smem:[#allocation3 + $0x1c]]  ;;  %v798_v34 = vmul.f32 %v130_v22, %v628_v0 }
  0x3a   :  { %1229 = sst [smem:[#allocation26_spill]] %s672_s28  ;;  %s694_s8 = sld [smem:[#allocation3 + $0x20]] }
  0x3b   :  { %1230 = sst [smem:[#allocation27_spill]] %s676_s30  ;;  %s696_s10 = sld [smem:[#allocation3 + $0x21]] }
  0x3c   :  { %1231 = sst [smem:[#allocation28_spill]] %s680_s6  ;;  %s698_s4 = sld [smem:[#allocation3 + $0x25]]  ;;  %v218_v25 = vstv %s686_s2 }
  0x3d   :  { %1232 = sst [smem:[#allocation29_spill]] %s682_s0  ;;  %s700_s6 = sld [smem:[#allocation3 + $0x26]]  ;;  %v810_v38 = vmul.f32 %v218_v25, %v628_v0 }
  0x3e   :  { %1233 = sst [smem:[#allocation30_spill]] %s684_s1  ;;  %s702_s0 = sld [smem:[#allocation3 + $0x4]] }
  0x3f   :  { %1234 = sst [smem:[#allocation31_spill]] %s688_s7  ;;  %s704_s1 = sld [smem:[#allocation3 + $0x9]] }
  0x40   :  { %1235 = sst [smem:[#allocation32_spill]] %s690_s9  ;;  %s706_s7 = sld [smem:[#allocation3 + $0xe]] }
  0x41   :  { %1236 = sst [smem:[#allocation33_spill]] %s692_s11  ;;  %s708_s9 = sld [smem:[#allocation3 + $0x13]] }
  0x42   :  { %1237 = sst [smem:[#allocation34_spill]] %s694_s8  ;;  %s710_s11 = sld [smem:[#allocation3 + $0x18]] }
  0x43   :  { %1238 = sst [smem:[#allocation35_spill]] %s696_s10  ;;  %s712_s10 = sld [smem:[#allocation3 + $0x1d]] }
  0x44   :  { %1239 = sst [smem:[#allocation36_spill]] %s698_s4  ;;  %s714_s4 = sld [smem:[#allocation3 + $0x22]] }
  0x45   :  { %1240 = sst [smem:[#allocation37_spill]] %s700_s6  ;;  %s716_s6 = sld [smem:[#allocation3 + $0x27]]  ;;  %v94_v44 = vstv %s704_s1 }
  0x46   :  { %1241 = sst [smem:[#allocation38_spill]] %s702_s0  ;;  %s718_s0 = sld [smem:[#allocation5]] }
  0x47   :  { %1242 = sst [smem:[#allocation39_spill]] %s704_s1  ;;  %s720_s8 = sld [smem:[#allocation5 + $0x1]] }
  0x48   :  { %1243 = sst [smem:[#allocation40_spill]] %s706_s7  ;;  %s722_s7 = sld [smem:[#allocation5 + $0x2]] }
  0x49   :  { %1244 = sst [smem:[#allocation41_spill]] %s708_s9  ;;  %s724_s9 = sld [smem:[#allocation4 + $0x1]] }
  0x4a   :  { %1245 = sst [smem:[#allocation42_spill]] %s710_s11  ;;  %s726_s11 = sld [smem:[#allocation4 + $0x6]]  ;;  %v314_v49 = vstv %s714_s4 }
  0x4b   :  { %1246 = sst [smem:[#allocation43_spill]] %s712_s10  ;;  %s728_s10 = sld [smem:[#allocation4 + $0xb]]  ;;  %v358_v50 = vstv %s716_s6 }
  0x4c   :  { %1247 = sst [smem:[#allocation44_spill]] %s714_s4  ;;  %s749_s13 = sld [smem:[#allocation4 + $0x24]] }
  0x4d   :  { %1248 = sst [smem:[#allocation45_spill]] %s716_s6  ;;  %s751_s15 = sld [smem:[#allocation4]] }
  0x4e   :  { %1249 = sst [smem:[#allocation46_spill]] %s718_s0  ;;  %s733_s0 = sld [smem:[#allocation4 + $0x10]]  ;;  %v847_v51 = vstv %s722_s7 }
  0x4f   :  { %1250 = sst [smem:[#allocation47_spill]] %s720_s8  ;;  %s735_s8 = sld [smem:[#allocation4 + $0x15]]  ;;  %v67_v54 = vstv %s724_s9 }
  0x50   :  { %1251 = sst [smem:[#allocation48_spill]] %s726_s11  ;;  %s741_s11 = sld [smem:[#allocation4 + $0x1a]] }
  0x51   :  { %1252 = sst [smem:[#allocation49_spill]] %s728_s10  ;;  %s743_s10 = sld [smem:[#allocation4 + $0x1f]] }
  0x52   :  { %1256 = sst [smem:[#allocation53_spill]] %s749_s13  ;;  %s1258_s17 = sld [smem:[#allocation28_spill]] }
  0x53   :  { %s1257_s16 = sld [smem:[#allocation29_spill]]  ;;  %s756_s14 = sld [smem:[#allocation4 + $0x5]] }
  0x54   :  { %s1260_s18 = sld [smem:[#allocation32_spill]]  ;;  %s758_s19 = sld [smem:[#allocation4 + $0xa]] }
  0x55   :  { %1253 = sst [smem:[#allocation50_spill]] %s735_s8  ;;  %s1263_s20 = sld [smem:[#allocation36_spill]] }
  0x56   :  { %1254 = sst [smem:[#allocation51_spill]] %s741_s11  ;;  %s1262_s21 = sld [smem:[#allocation34_spill]] }
  0x57   :  { %1255 = sst [smem:[#allocation52_spill]] %s743_s10  ;;  %s764_s3 = sld [smem:[#allocation4 + $0xf]] }
  0x58   :  { %s766_s12 = sld [smem:[#allocation4 + $0x14]]  ;;  %s1266_s27 = sld [smem:[#allocation30_spill]]  ;;  %v134_v24 = vstv %s1258_s17 }
  0x59   :  { %1259 = sst [smem:[#allocation29_spill]] %s756_s14  ;;  %v174_v23 = vstv %s1257_s16  ;;  %s1267_s23 = sld [smem:[#allocation31_spill]] }
  0x5a   :  { %1261 = sst [smem:[#allocation32_spill]] %s758_s19  ;;  %s772_s22 = sld [smem:[#allocation4 + $0x19]]  ;;  %v262_v26 = vstv %s1260_s18  ;;  %v801_v35 = vmul.f32 %v174_v23, %v628_v0 }
  0x5b   :  { %s774_s14 = sld [smem:[#allocation4 + $0x1e]]  ;;  %s1270_s29 = sld [smem:[#allocation33_spill]]  ;;  %v350_v29 = vstv %s1263_s20  ;;  %v813_v39 = vmul.f32 %v262_v26, %v628_v0 }
  0x5c   :  { %s1271_s26 = sld [smem:[#allocation35_spill]]  ;;  %s782_s25 = sld [smem:[#allocation4 + $0x23]]  ;;  %v306_v28 = vstv %s1262_s21  ;;  %v824_v42 = vmul.f32 %v350_v29, %v628_v0 }
  0x5d   :  { %1264 = sst [smem:[#allocation34_spill]] %s764_s3  ;;  %s784_s24 = sld [smem:[#allocation4 + $0x4]]  ;;  %v821_v41 = vmul.f32 %v306_v28, %v628_v0  ;;  %v64_v0 = vstv %s751_s15 }
  0x5e   :  { %1265 = sst [smem:[#allocation36_spill]] %s766_s12  ;;  %s1273_s16 = sld [smem:[#allocation37_spill]]  ;;  %v178_v32 = vstv %s1266_s27 }
  0x5f   :  { %s791_s5 = sld [smem:[#allocation4 + $0x9]]  ;;  %s793_s2 = sld [smem:[#allocation4 + $0xe]]  ;;  %v222_v33 = vstv %s1267_s23 }
  0x60   :  { %1268 = sst [smem:[#allocation54_spill]] %s772_s22  ;;  %s1277_s20 = sld [smem:[#allocation40_spill]] }
  0x61   :  { %1269 = sst [smem:[#allocation55_spill]] %s774_s14  ;;  %s1276_s18 = sld [smem:[#allocation38_spill]]  ;;  %v266_v36 = vstv %s1270_s29 }
  0x62   :  { %1272 = sst [smem:[#allocation56_spill]] %s782_s25  ;;  %s803_s21 = sld [smem:[#allocation4 + $0x13]]  ;;  %v310_v37 = vstv %s1271_s26 }
  0x63   :  { %s805_s17 = sld [smem:[#allocation4 + $0x18]]  ;;  %s1281_s23 = sld [smem:[#allocation42_spill]] }
  0x64   :  { %s1280_s30 = sld [smem:[#allocation41_spill]]  ;;  %s1282_s27 = sld [smem:[#allocation43_spill]]  ;;  %v354_v40 = vstv %s1273_s16 }
  0x65   :  { %1274 = sst [smem:[#allocation57_spill]] %s791_s5  ;;  %s815_s28 = sld [smem:[#allocation4 + $0x1d]] }
  0x66   :  { %1275 = sst [smem:[#allocation58_spill]] %s793_s2  ;;  %s817_s2 = sld [smem:[#allocation4 + $0x22]]  ;;  %v138_v45 = vstv %s1277_s20 }
  0x67   :  { %v52_v43 = vstv %s1276_s18  ;;  %s1285_s26 = sld [smem:[#allocation47_spill]]  ;;  %s827_s29 = sld [smem:[#allocation4 + $0x27]] }
  0x68   :  { %1278 = sst [smem:[#allocation59_spill]] %s803_s21  ;;  %s829_s21 = sld [smem:[#allocation4 + $0x3]] }
  0x69   :  { %1279 = sst [smem:[#allocation60_spill]] %s805_s17  ;;  %s1287_s17 = sld [smem:[#allocation46_spill]]  ;;  %v226_v47 = vstv %s1281_s23 }
  0x6a   :  { %s1288_s16 = sld [smem:[#allocation48_spill]]  ;;  %s835_s5 = sld [smem:[#allocation4 + $0xd]]  ;;  %v182_v46 = vstv %s1280_s30  ;;  %v270_v48 = vstv %s1282_s27 }
  0x6b   :  { %1283 = sst [smem:[#allocation61_spill]] %s815_s28  ;;  %s1289_s28 = sld [smem:[#allocation49_spill]] }
  0x6c   :  { %1284 = sst [smem:[#allocation62_spill]] %s817_s2  ;;  %s833_s2 = sld [smem:[#allocation4 + $0x8]] }
  0x6d   :  { %1286 = sst [smem:[#allocation47_spill]] %s827_s29  ;;  %s841_s18 = sld [smem:[#allocation4 + $0x12]]  ;;  %v850_v52 = vstv %s1285_s26 }
  0x6e   :  { %s843_s1 = sld [smem:[#allocation4 + $0x17]]  ;;  %s1292_s20 = sld [smem:[#allocation29_spill]] }
  0x6f   :  { %v853_v53 = vstv %s1287_s17  ;;  %s855_s27 = sld [smem:[#allocation4 + $0x1c]]  ;;  %s857_s4 = sld [smem:[#allocation4 + $0x21]] }
  0x70   :  { %1290 = sst [smem:[#allocation46_spill]] %s835_s5  ;;  %v107_v55 = vstv %s1288_s16  ;;  %s969_s6 = sld [smem:[#allocation4 + $0x26]] }
  0x71   :  { %v151_v56 = vstv %s1289_s28  ;;  %s981_s29 = sld [smem:[#allocation4 + $0x7]]  ;;  %s983_s5 = sld [smem:[#allocation4 + $0xc]] }
  0x72   :  { %s991_s26 = sld [smem:[#allocation4 + $0x16]]  ;;  %s993_s17 = sld [smem:[#allocation4 + $0x1b]] }
  0x73   :  { %1291 = sst [smem:[#allocation48_spill]] %s841_s18  ;;  %s989_s18 = sld [smem:[#allocation4 + $0x11]] }
  0x74   :  { %v103_v14 = vstv %s1292_s20  ;;  %s1332_s7 = sld [smem:[#allocation50_spill]]  ;;  %s1333_s10 = sld [smem:[#allocation51_spill]] }
  0x75   :  { %1293 = sst [smem:[#allocation49_spill]] %s855_s27  ;;  %s975_s27 = sld [smem:[#allocation4 + $0x2]] }
  0x76   :  { %s1334_s13 = sld [smem:[#allocation32_spill]]  ;;  %s1335_s11 = sld [smem:[#allocation52_spill]] }
  0x77   :  { %s1336_s8 = sld [smem:[#allocation53_spill]]  ;;  %s1337_s12 = sld [smem:[#allocation34_spill]] }
  0x78   :  { %s1338_s3 = sld [smem:[#allocation57_spill]]  ;;  %s1339_s9 = sld [smem:[#allocation36_spill]] }
  0x79   :  { %s1341_s16 = sld [smem:[#allocation54_spill]]  ;;  %s1344_s14 = sld [smem:[#allocation58_spill]] }
  0x7a   :  { %s1347_s15 = sld [smem:[#allocation55_spill]]  ;;  %s1349_s28 = sld [smem:[#allocation56_spill]] }
  0x7b   :  { %s1354_s20 = sld [smem:[#allocation46_spill]]  ;;  %s1358_s19 = sld [smem:[#allocation48_spill]] }
  0x7c   :  { %s1364_s22 = sld [smem:[#allocation61_spill]]  ;;  %s1370_s23 = sld [smem:[#allocation49_spill]] }
  0x7d   :  { %s1373_s25 = sld [smem:[#allocation47_spill]]  ;;  %s1097_s30 = sld [smem:[#allocation4 + $0x25]] }
  0x95   :  { %v29_v28 = vpop.permute.xlu0 %28  ;;  %v33_v25 = vpop.permute.xlu1 %32 }
  0x96   :  { %v38_v19 = vmul.f32 %v37_v1, %v29_v28  ;;  %v80_v22 = vmul.f32 %v79_v2, %v29_v28  ;;  %v124_v62 = vmul.f32 %v123_v3, %v29_v28  ;;  %v168_v26 = vmul.f32 %v167_v4, %v29_v28 }
  0x97   :  { %v212_v31 = vmul.f32 %v211_v5, %v29_v28  ;;  %v256_v63 = vmul.f32 %v255_v6, %v29_v28  ;;  %v300_v1 = vmul.f32 %v299_v7, %v29_v28  ;;  %v344_v2 = vmul.f32 %v343_v8, %v29_v28 }
  0x98   :  { %v49_v3 = vmul.f32 %v48_v20, %v33_v25  ;;  %v91_v4 = vmul.f32 %v90_v21, %v33_v25  ;;  %v135_v57 = vmul.f32 %v134_v24, %v33_v25  ;;  %v179_v29 = vmul.f32 %v178_v32, %v33_v25 }
  0x99   :  { %v31_v5 = vpop.permute.xlu0 %30  ;;  %v223_v23 = vmul.f32 %v222_v33, %v33_v25  ;;  %v267_v6 = vmul.f32 %v266_v36, %v33_v25  ;;  %v311_v7 = vmul.f32 %v310_v37, %v33_v25  ;;  %v355_v15 = vmul.f32 %v354_v40, %v33_v25 }
  0x9a   :  { %v41_v8 = vmul.f32 %v40_v9, %v31_v5  ;;  %v83_v20 = vmul.f32 %v82_v10, %v31_v5  ;;  %v127_v28 = vmul.f32 %v126_v11, %v31_v5  ;;  %v171_v21 = vmul.f32 %v170_v12, %v31_v5 }
  0x9b   :  { %v215_v24 = vmul.f32 %v214_v13, %v31_v5  ;;  %v259_v32 = vmul.f32 %v258_v16, %v31_v5  ;;  %v303_v33 = vmul.f32 %v302_v17, %v31_v5  ;;  %v347_v36 = vmul.f32 %v346_v18, %v31_v5 }
  0x9c   :  { %v42_v61 = vadd.f32 %v41_v8, %v38_v19  ;;  %v84_v37 = vadd.f32 %v83_v20, %v80_v22  ;;  %v128_v60 = vadd.f32 %v127_v28, %v124_v62  ;;  %v172_v40 = vadd.f32 %v171_v21, %v168_v26 }
  0x9d   :  { %v216_v25 = vadd.f32 %v215_v24, %v212_v31  ;;  %v260_v9 = vadd.f32 %v259_v32, %v256_v63  ;;  %v304_v59 = vadd.f32 %v303_v33, %v300_v1  ;;  %v348_v10 = vadd.f32 %v347_v36, %v344_v2 }
  0x9e   :  { %v46_v11 = vadd.f32 %v780_v27, %v42_v61  ;;  %v88_v12 = vadd.f32 %v789_v30, %v84_v37  ;;  %v132_v13 = vadd.f32 %v798_v34, %v128_v60  ;;  %v176_v16 = vadd.f32 %v801_v35, %v172_v40  ;;  %v35_v30 = vpop.permute.xlu1 %34 }
  0x9f   :  { %v220_v17 = vadd.f32 %v810_v38, %v216_v25  ;;  %v264_v18 = vadd.f32 %v813_v39, %v260_v9  ;;  %v308_v62 = vadd.f32 %v821_v41, %v304_v59  ;;  %v352_v27 = vadd.f32 %v824_v42, %v348_v10 }
  0xa0   :  { %v50_v61 = vadd.f32 %v49_v3, %v46_v11  ;;  %v92_v34 = vadd.f32 %v91_v4, %v88_v12  ;;  %v136_v60 = vadd.f32 %v135_v57, %v132_v13  ;;  %v180_v63 = vadd.f32 %v179_v29, %v176_v16 }
  0xa1   :  { %v224_v35 = vadd.f32 %v223_v23, %v220_v17  ;;  %v268_v19 = vadd.f32 %v267_v6, %v264_v18  ;;  %v312_v22 = vadd.f32 %v311_v7, %v308_v62  ;;  %v356_v38 = vadd.f32 %v355_v15, %v352_v27 }
  0xa2   :  { %v53_v26 = vmul.f32 %v52_v43, %v35_v30  ;;  %v95_v39 = vmul.f32 %v94_v44, %v35_v30  ;;  %v139_v41 = vmul.f32 %v138_v45, %v35_v30  ;;  %v183_v59 = vmul.f32 %v182_v46, %v35_v30 }
  0xa3   :  { %v227_v42 = vmul.f32 %v226_v47, %v35_v30  ;;  %v271_v31 = vmul.f32 %v270_v48, %v35_v30  ;;  %v315_v1 = vmul.f32 %v314_v49, %v35_v30  ;;  %v359_v29 = vmul.f32 %v358_v50, %v35_v30 }
  0xa4   :  { %v54_v23 = vadd.f32 %v53_v26, %v50_v61  ;;  %v96_v57 = vadd.f32 %v95_v39, %v92_v34  ;;  %v140_v2 = vadd.f32 %v139_v41, %v136_v60  ;;  %v184_v15 = vadd.f32 %v183_v59, %v180_v63 }
  0xa5   :  { %v228_v3 = vadd.f32 %v227_v42, %v224_v35  ;;  %v272_v43 = vadd.f32 %v271_v31, %v268_v19  ;;  %v316_v4 = vadd.f32 %v315_v1, %v312_v22  ;;  %v360_v44 = vadd.f32 %v359_v29, %v356_v38 }
  0xa6   :  { %v56_v45 = vmul.f32 %v847_v51, %v54_v23  ;;  %v97_v46 = vmul.f32 %v96_v57, %v847_v51  ;;  %v141_v47 = vmul.f32 %v140_v2, %v847_v51  ;;  %v185_v48 = vmul.f32 %v184_v15, %v847_v51 }
  0xa7   :  { %v229_v49 = vmul.f32 %v228_v3, %v847_v51  ;;  %v273_v50 = vmul.f32 %v272_v43, %v847_v51  ;;  %v317_v5 = vmul.f32 %v316_v4, %v847_v51  ;;  %v361_v6 = vmul.f32 %v360_v44, %v847_v51 }
  0xa8   :  { %v58_v7 = vadd.f32 %v850_v52, %v56_v45  ;;  %v98_v8 = vadd.f32 %v97_v46, %v850_v52  ;;  %v142_v20 = vadd.f32 %v141_v47, %v850_v52  ;;  %v186_v28 = vadd.f32 %v185_v48, %v850_v52 }
  0xa9   :  { %v230_v21 = vadd.f32 %v229_v49, %v850_v52  ;;  %v274_v24 = vadd.f32 %v273_v50, %v850_v52  ;;  %v318_v51 = vadd.f32 %v317_v5, %v850_v52  ;;  %v362_v32 = vadd.f32 %v361_v6, %v850_v52 }
  0xaa   :  { %v59_v33 = vmul.f32 %v58_v7, %v54_v23  ;;  %v99_v36 = vmul.f32 %v98_v8, %v96_v57  ;;  %v143_v37 = vmul.f32 %v142_v20, %v140_v2  ;;  %v187_v40 = vmul.f32 %v186_v28, %v184_v15 }
  0xab   :  { %v231_v25 = vmul.f32 %v230_v21, %v228_v3  ;;  %v275_v9 = vmul.f32 %v274_v24, %v272_v43  ;;  %v319_v10 = vmul.f32 %v318_v51, %v316_v4  ;;  %v363_v11 = vmul.f32 %v362_v32, %v360_v44 }
  0xac   :  { %v61_v12 = vadd.f32 %v853_v53, %v59_v33  ;;  %v100_v52 = vadd.f32 %v99_v36, %v853_v53  ;;  %v144_v13 = vadd.f32 %v143_v37, %v853_v53  ;;  %v188_v16 = vadd.f32 %v187_v40, %v853_v53 }
  0xad   :  { %v232_v17 = vadd.f32 %v231_v25, %v853_v53  ;;  %v276_v18 = vadd.f32 %v275_v9, %v853_v53  ;;  %v320_v62 = vadd.f32 %v319_v10, %v853_v53  ;;  %v364_v27 = vadd.f32 %v363_v11, %v853_v53 }
  0xae   :  { %v62_v30 = vmul.f32 %v61_v12, %v54_v23  ;;  %v101_v61 = vmul.f32 %v100_v52, %v96_v57  ;;  %v1003_v34 = vmul.f32 %v144_v13, %v140_v2  ;;  %v379_v60 = vstv %s969_s6  ;;  %s1381_s6 = smov 127  }
  0xaf   :  { %v1006_v63 = vmul.f32 %v188_v16, %v184_v15  ;;  %v1008_v35 = vmul.f32 %v232_v17, %v228_v3  ;;  %v1010_v19 = vmul.f32 %v276_v18, %v272_v43  ;;  %v70_v22 = vstv %s975_s27  ;;  %s1380_s27 = smov 126  }
  0xb0   :  { %v68_v53 = vmul.f32 %v67_v54, %v62_v30  ;;  %v108_v38 = vmul.f32 %v107_v55, %v101_v61  ;;  %v111_v26 = vstv %s981_s29  ;;  %v155_v39 = vstv %s983_s5  ;;  %s581_s29 = smov [#allocation6]  }
  0xb1   :  { %v1019_v41 = vmul.f32 %v320_v62, %v316_v4  ;;  %v1021_v59 = vmul.f32 %v364_v27, %v360_v44  ;;  %v199_v42 = vstv %s989_s18  ;;  %v243_v31 = vstv %s991_s26  ;;  %s415_s5 = sshll.u32 %s581_s29, 4  ;;  %s416_s5 = int_to_ptr.vmem [resolvable:$true] %s415_s5 }
  0xb2   :  { %v109_v1 = vadd.f32 %v108_v38, %v68_v53  ;;  %v152_v54 = vmul.f32 %v151_v56, %v1003_v34  ;;  %v65_v55 = vmul.f32 %v64_v0, %v62_v30  ;;  %v104_v29 = vmul.f32 %v103_v14, %v101_v61  ;;  %s547_s18 = scalar_lea.vmem %s416_s5, 128  ;;  %p552_p0 = scmp.lt.s32.totalorder %s416_s5, %s416_s5 }
  0xb3   :  { %v1340_v23 = vstv %s733_s0  ;;  %v1342_v2 = vstv %s1332_s7  ;;  %v1343_v3 = vstv %s1333_s10  ;;  %v287_v4 = vstv %s993_s17  ;;  %s1352_s0 = sld [smem:[#allocation59_spill]]  ;;  %p548_p13 = scmp.ne.s32.totalorder %s416_s5, %s547_s18 }
  0xb4   :  { %v196_v57 = vmul.f32 %v1340_v23, %v1006_v63  ;;  %v240_v15 = vmul.f32 %v1342_v2, %v1008_v35  ;;  %v284_v43 = vmul.f32 %v1343_v3, %v1010_v19  ;;  %v153_v56 = vadd.f32 %v152_v54, %v109_v1  ;;  %p553_p1 = scmp.lt.s32.totalorder %s547_s18, %s547_s18 }
  0xb5   :  { %v105_v44 = vadd.f32 %v104_v29, %v65_v55  ;;  %v1345_v0 = vstv %s1334_s13  ;;  %v1346_v14 = vstv %s784_s24  ;;  %v1348_v47 = vstv %s1335_s11  ;;  %s1357_s24 = sld [smem:[#allocation60_spill]] }
  0xb6   :  { %v148_v45 = vmul.f32 %v1345_v0, %v1003_v34  ;;  %v77_v46 = vmul.f32 %v1346_v14, %v62_v30  ;;  %v328_v48 = vmul.f32 %v1348_v47, %v1019_v41  ;;  %v1350_v49 = vstv %s1336_s8  ;;  %p554_p2 = por %p553_p1, %p552_p0 }
  0xb7   :  { %v372_v50 = vmul.f32 %v1350_v49, %v1021_v59  ;;  %v1351_v5 = vstv %s1337_s12  ;;  %v1353_v7 = vstv %s1338_s3  ;;  %v197_v20 = vadd.f32 %v196_v57, %v153_v56 }
  0xb8   :  { %v192_v6 = vmul.f32 %v1351_v5, %v1006_v63  ;;  %v120_v8 = vmul.f32 %v1353_v7, %v101_v61  ;;  %v149_v28 = vadd.f32 %v148_v45, %v105_v44  ;;  %v1355_v21 = vstv %s1339_s9  ;;  %p555_p3 = pnand %p554_p2, %p548_p13 }
  0xb9   :  { %v236_v24 = vmul.f32 %v1355_v21, %v1008_v35  ;;  %v1356_v51 = vstv %s1341_s16  ;;  %v1359_v36 = vstv %s1344_s14  ;;  %v1360_v40 = vstv %s829_s21  ;;  %s1369_s21 = sld [smem:[#allocation62_spill]] }
  0xba   :  { %v280_v32 = vmul.f32 %v1356_v51, %v1010_v19  ;;  %v121_v33 = vadd.f32 %v120_v8, %v77_v46  ;;  %v164_v37 = vmul.f32 %v1359_v36, %v1003_v34  ;;  %v74_v25 = vmul.f32 %v1360_v40, %v62_v30 }
  0xbb   :  { %v1361_v9 = vstv %s833_s2  ;;  %v241_v11 = vadd.f32 %v240_v15, %v197_v20  ;;  %v193_v12 = vadd.f32 %v192_v6, %v149_v28  ;;  %v1362_v52 = vstv %s1347_s15  ;;  %s1089_s2 = sld [smem:[#allocation4 + $0x20]] }
  0xbc   :  { %v116_v10 = vmul.f32 %v1361_v9, %v101_v61  ;;  %v324_v13 = vmul.f32 %v1362_v52, %v1019_v41  ;;  %v1363_v16 = vstv %s1349_s28  ;;  %v165_v18 = vadd.f32 %v164_v37, %v121_v33 }
  0xbd   :  { %v368_v17 = vmul.f32 %v1363_v16, %v1021_v59  ;;  %v1365_v62 = vstv %s1352_s0  ;;  %v1366_v38 = vstv %s1354_s20  ;;  %v285_v54 = vadd.f32 %v284_v43, %v241_v11 }
  0xbe   :  { %v208_v27 = vmul.f32 %v1365_v62, %v1006_v63  ;;  %v117_v53 = vadd.f32 %v116_v10, %v74_v25  ;;  %v160_v1 = vmul.f32 %v1366_v38, %v1003_v34  ;;  %v237_v55 = vadd.f32 %v236_v24, %v193_v12 }
  0xbf   :  { %v1367_v29 = vstv %s1357_s24  ;;  %v1368_v57 = vstv %s1358_s19  ;;  %v71_v56 = vmul.f32 %v70_v22, %v62_v30  ;;  %v112_v44 = vmul.f32 %v111_v26, %v101_v61 }
  0xc0   :  { %v252_v23 = vmul.f32 %v1367_v29, %v1008_v35  ;;  %v204_v2 = vmul.f32 %v1368_v57, %v1006_v63  ;;  %v209_v15 = vadd.f32 %v208_v27, %v165_v18  ;;  %v161_v3 = vadd.f32 %v160_v1, %v117_v53 }
  0xc1   :  { %v329_v0 = vadd.f32 %v328_v48, %v285_v54  ;;  %v281_v45 = vadd.f32 %v280_v32, %v237_v55  ;;  %v1371_v14 = vstv %s1364_s22  ;;  %v1372_v46 = vstv %s843_s1  ;;  %s1378_s1 = smov 1  }
  0xc2   :  { %v296_v43 = vmul.f32 %v1371_v14, %v1010_v19  ;;  %v248_v47 = vmul.f32 %v1372_v46, %v1008_v35  ;;  %v253_v49 = vadd.f32 %v252_v23, %v209_v15  ;;  %v205_v5 = vadd.f32 %v204_v2, %v161_v3 }
  0xc3   :  { %v113_v6 = vadd.f32 %v112_v44, %v71_v56  ;;  %v156_v7 = vmul.f32 %v155_v39, %v1003_v34  ;;  %v373_v30 = vadd.f32 %v372_v50, %v329_v0  ;;  %v325_v61 = vadd.f32 %v324_v13, %v281_v45 }
  0xc4   :  { %v1374_v22 = vstv %s1369_s21  ;;  %v1375_v48 = vstv %s1370_s23  ;;  %v297_v20 = vadd.f32 %v296_v43, %v253_v49  ;;  %v249_v28 = vadd.f32 %v248_v47, %v205_v5 }
  0xc5   :  { %v340_v26 = vmul.f32 %v1374_v22, %v1019_v41  ;;  %v292_v8 = vmul.f32 %v1375_v48, %v1010_v19  ;;  %v157_v21 = vadd.f32 %v156_v7, %v113_v6  ;;  %v200_v24 = vmul.f32 %v199_v42, %v1006_v63 }
  0xc6   :  { %v394_v51 = vmul.f32 %v863_v58, %v373_v30  ;;  %v369_v34 = vadd.f32 %v368_v17, %v325_v61  ;;  %v1376_v39 = vstv %s1373_s25  ;;  %v1377_v32 = vstv %s857_s4  ;;  %s1379_s4 = smov 2  }
  0xc7   :  { %v384_v50 = vmul.f32 %v1376_v39, %v1021_v59  ;;  %v336_v33 = vmul.f32 %v1377_v32, %v1019_v41  ;;  %v341_v36 = vadd.f32 %v340_v26, %v297_v20  ;;  %v293_v37 = vadd.f32 %v292_v8, %v249_v28 }
  0xc8   :  { %v201_v40 = vadd.f32 %v200_v24, %v157_v21  ;;  %v244_v25 = vmul.f32 %v243_v31, %v1008_v35  ;;  %395 = vrot.lane.b32.xlu1 %v394_v51, %s1378_s1  ;;  %v391_v63 = vmul.f32 %v863_v58, %v369_v34  ;;  %v380_v42 = vmul.f32 %v379_v60, %v1021_v59 }
  0xc9   :  { %v331_v9 = vstv %s1089_s2  ;;  %v385_v10 = vadd.f32 %v384_v50, %v341_v36  ;;  %v337_v11 = vadd.f32 %v336_v33, %v293_v37  ;;  %v288_v52 = vmul.f32 %v287_v4, %v1010_v19 }
  0xca   :  { %v245_v12 = vadd.f32 %v244_v25, %v201_v40  ;;  %392 = vrot.lane.b32.xlu0 %v391_v63, %s1379_s4  ;;  %v375_v13 = vstv %s1097_s30  ;;  %v332_v17 = vmul.f32 %v331_v9, %v1019_v41 }
  0xcb   :  { %v404_v16 = vmul.f32 %v863_v58, %v385_v10  ;;  %v381_v35 = vadd.f32 %v380_v42, %v337_v11  ;;  %v376_v62 = vmul.f32 %v375_v13, %v1021_v59 }
  0xcc   :  { %v289_v31 = vadd.f32 %v288_v52, %v245_v12 }
  0xcd   :  { %405 = vrot.lane.b32.xlu1 %v404_v16, %s1380_s27  ;;  %v400_v60 = vmul.f32 %v863_v58, %v381_v35 }
  0xce   :  { %v333_v18 = vadd.f32 %v332_v17, %v289_v31 }
  0xcf   :  { %401 = vrot.lane.b32.xlu0 %v400_v60, %s1381_s6 }
  0xd0   :  { %v377_v27 = vadd.f32 %v376_v62, %v333_v18 }
  0xd2   :  { %v398_v19 = vmul.f32 %v863_v58, %v377_v27 }
 0x13a   :  { %v396_v4 = vpop.permute.xlu1 %395 }
 0x13c   :  { %v393_v53 = vpop.permute.xlu0 %392 }
 0x13d   :  { %v397_v38 = vadd.f32 %v396_v4, %v393_v53 }
 0x13f   :  { %v399_v1 = vadd.f32 %v398_v19, %v397_v38  ;;  %v406_v55 = vpop.permute.xlu1 %405 }
 0x141   :  { %v402_v54 = vpop.permute.xlu0 %401 }
 0x142   :  { %v403_v41 = vadd.f32 %v402_v54, %v399_v1 }
 0x144   :  { %v407_v29 = vadd.f32 %v406_v55, %v403_v41 }
 0x146   :  { %408 = vst [vmem:[#allocation6] sm:$0xff] %v407_v29 }
 0x147   :  { %558 = shalt.err (!%p555_p3)
}
 0x148   :  { %s1382_s7 = sld [smem:[#allocation63_spill]] }
 0x14e   :  { %s559_s10 = scalar_lea.hbm %s1382_s7, 128 }
 0x14f   :  { %p560_p4 = scmp.ne.s32.totalorder %s1382_s7, %s559_s10  ;;  %p563_p5 = scmp.lt.u32.totalorder %s559_s10, %s1382_s7 }
 0x151   :  { %p565_p6 = pnand %p563_p5, %p560_p4 }
 0x153   :  { %568 = shalt.err (!%p565_p6)
}
 0x154   :  { %418 = dma.vmem_to_hbm [thread:$0]  %s416_s5, 128, %s1382_s7, [#allocation7]  }
 0x155   :  { %571 = dma.done.wait [#allocation7], 128  }
 0x156   :  { %572 = vsyncadd [#allocation7], 4294967168 }
 0x157   :  { %422 = vsyncpa [#allocation7], 1 }

</bundles_post_ra>
